<compile_context>
chip_gen: v7x
topology: tpu7x:2x2x1
jax: 0.10.0
libtpu: 0.0.40
codegen_flags: <defaults>
</compile_context>

<pallas_src>
import jax
import jax.numpy as jnp
from jax.experimental import pallas as pl
from jax.experimental.pallas import tpu as pltpu


# --------------------------------------------------------------------------- #
# Kernels
# --------------------------------------------------------------------------- #
def _seg_matmul_kernel(x_ref, m_ref, w_ref, o_ref):
    """Lane-packed tile: each 128-lane row holds k = 128 // C original rows."""
    x = x_ref[...].astype(jnp.float32)                      # (bp, W)
    # Exact-ish segment sums with 2 bf16 MXU passes: x = hi + lo (both bf16),
    # mask is exact 0/1 in bf16, accumulation in f32.  Error ~1e-5 relative.
    hi = x.astype(jnp.bfloat16)
    lo = (x - hi.astype(jnp.float32)).astype(jnp.bfloat16)
    m = m_ref[...]                                          # (W, W) bf16 0/1
    s = (jnp.dot(hi, m, preferred_element_type=jnp.float32) +
         jnp.dot(lo, m, preferred_element_type=jnp.float32))   # (bp, W) sums
    inv = pl.reciprocal(s, approx=False)                    # exact; hidden by DMA
    # w_ref already holds C * weight tiled to W lanes -> x / mean * weight.
    o_ref[...] = (x * inv * w_ref[...]).astype(o_ref.dtype)


def _rowsum_kernel(x_ref, w_ref, o_ref):
    """Unpacked tile: one original row per (bp, W) row, W a multiple of 128.

    Padded channel lanes (if any) hold zeros, so the row sum equals the sum
    over the real C channels.
    """
    x = x_ref[...].astype(jnp.float32)                      # (bp, W)
    s = jnp.sum(x, axis=-1, keepdims=True)                  # (bp, 1)
    inv = pl.reciprocal(s, approx=False)
    o_ref[...] = (x * inv * w_ref[...]).astype(o_ref.dtype)


# --------------------------------------------------------------------------- #
# Wrapper
# --------------------------------------------------------------------------- #
def _vmem_budget():
    """Pick (vmem_limit_bytes, target f32-working-set bytes per tile)."""
    limit = 32 * 1024 * 1024          # safe on v5e/v6e/v7x (raise from v5e's 16 MiB)
    tile = 3 * 1024 * 1024            # f32 working-set per tile
    try:
        info = pltpu.get_tpu_info()
        if int(info.vmem_capacity_bytes) >= 96 * 1024 * 1024:
            # v5e/v6e: 128 MiB physical VMEM per TensorCore -> bigger tiles pay off.
            limit = 64 * 1024 * 1024
            tile = 6 * 1024 * 1024
    except Exception:
        pass
    return limit, tile


def trip_layer_norm(x: jax.Array,
                    weight: jax.Array | None = None,
                    *,
                    target_block_bytes: int | None = None) -> jax.Array:
    """Pallas TPU implementation of TrIPLayerNorm.forward.

    x:      (..., num_channels)
    weight: (num_channels,) or None (elementwise_affine=False)
    """
    orig_shape = x.shape
    C = orig_shape[-1]
    N = 1
    for d in orig_shape[:-1]:
        N *= d
    x2d = x.reshape(N, C)

    LANES = 128
    # ---- lane-dense layout ---------------------------------------------------
    if C % LANES == 0:
        # Already lane-dense: one row per original row.
        mode, k, pad_rows, pad_ch, W, Np = "rowsum", 1, 0, 0, C, N
        xin = x2d
    elif LANES % C == 0:
        # Pack k rows into one 128-lane packed row (free row-major regroup).
        mode, k = "pack", LANES // C
        pad_rows = (-N) % k
        if pad_rows:
            # Rare ragged case: pad < k rows with ones (finite mean; sliced off).
            x2d = jnp.concatenate([x2d, jnp.ones((pad_rows, C), x2d.dtype)], axis=0)
        Np, W, pad_ch = x2d.shape[0] // k, LANES, 0
        xin = x2d.reshape(Np, W)
    else:
        # Awkward C: zero-pad channels to next multiple of 128 so the output
        # store is lane-dense (avoids masked vst, the biggest measured lever).
        # TODO(synk): lcm(C,128) packing would also avoid the padded-lane HBM traffic.
        mode, k, pad_rows = "rowsum", 1, 0
        W = ((C + LANES - 1) // LANES) * LANES
        pad_ch = W - C
        xin = jnp.pad(x2d, ((0, 0), (0, pad_ch)))
        Np = N

    # ---- fold the mean->sum constant into the affine weight -------------------
    # out = x / mean * w = x * (C*w) / sum ; the C factor is needed even when
    # weight is None, so the multiply is never wasted work.
    if weight is None:
        w_row = jnp.full((1, C), float(C), dtype=jnp.float32)
    else:
        w_row = (jnp.asarray(weight, dtype=jnp.float32) * float(C)).reshape(1, C)
    if mode == "pack":
        w_in = jnp.tile(w_row, (1, k))                    # (1, W): lane j -> C*w[j % C]
    else:
        w_in = jnp.pad(w_row, ((0, 0), (0, pad_ch))) if pad_ch else w_row

    # ---- row tiling ------------------------------------------------------------
    vmem_limit, auto_tile = _vmem_budget()
    tile_bytes = auto_tile if target_block_bytes is None else target_block_bytes

    itemsize = jnp.dtype(x.dtype).itemsize
    sub = max(8, 32 // itemsize)                          # 8 f32, 16 bf16, 32 int8
    # Budget by the f32 working set (kernel upcasts), not the input itemsize.
    rows = max(sub, (tile_bytes // (W * 4)) // sub * sub)
    # Guarantee >= 4 grid steps for non-tiny inputs: DMA/compute overlap and
    # megacore sharding on v7x.
    min_grid = 4
    if Np >= min_grid * sub:
        cap = (((Np + min_grid - 1) // min_grid) + sub - 1) // sub * sub
        rows = min(rows, cap)
    bp = Np if rows >= Np else rows                       # ragged last block is OK
    grid = (pl.cdiv(Np, bp),)

    x_spec = pl.BlockSpec((bp, W), lambda i: (i, 0))
    o_spec = pl.BlockSpec((bp, W), lambda i: (i, 0))
    w_spec = pl.BlockSpec((1, W), lambda i: (0, 0))

    if mode == "pack":
        # (W, W) block-diagonal 0/1 mask: mask[p, q] = 1 iff p // C == q // C.
        # Exact in bf16 -> half the VMEM and single-pass MXU digits.
        mask = jnp.kron(jnp.eye(k, dtype=jnp.float32),
                        jnp.ones((C, C), dtype=jnp.float32)).astype(jnp.bfloat16)
        m_spec = pl.BlockSpec((W, W), lambda i: (0, 0))   # stays resident in VMEM
        kernel = _seg_matmul_kernel
        in_specs = [x_spec, m_spec, w_spec]
        args = (xin, mask, w_in)
    else:
        kernel = _rowsum_kernel
        in_specs = [x_spec, w_spec]
        args = (xin, w_in)

    out = pl.pallas_call(
        kernel,
        out_shape=jax.ShapeDtypeStruct((Np, W), x.dtype),
        grid_spec=pltpu.PrefetchScalarGridSpec(
            num_scalar_prefetch=0,
            grid=grid,
            in_specs=in_specs,
            out_specs=o_spec,
        ),
        compiler_params=pltpu.CompilerParams(
            dimension_semantics=("parallel",),
            vmem_limit_bytes=vmem_limit),
    )(*args)

    if mode == "pack":
        out = out.reshape(Np * k, C)
        if pad_rows:
            out = out[:N]
    else:
        if pad_ch:
            out = out[:, :C]
    return out.reshape(orig_shape)


# --------------------------------------------------------------------------- #
# Demo / self-check
# --------------------------------------------------------------------------- #
if __name__ == "__main__":
    # Module config: num_channels = 32, elementwise_affine = True.
    num_channels = 32
    batch, seq = 2, 8

    key = jax.random.PRNGKey(0)
    kx, kw = jax.random.split(key)
    # Positive inputs so the per-row mean is well away from zero
    # (mean == 0 -> inf/NaN, matching the PyTorch module's own semantics).
    x = jax.random.uniform(kx, (batch, seq, num_channels),
                           dtype=jnp.float32, minval=0.5, maxval=1.5)
    # Non-trivial per-channel weight (module inits to ones; any value is a valid
    # forward and exercises the fold/tile of the affine scale).
    weight = jax.random.uniform(kw, (num_channels,),
                                dtype=jnp.float32, minval=0.5, maxval=1.5)

    y = trip_layer_norm(x, weight)
    y = jax.block_until_ready(y)

    # Pure-JAX reference of the forward semantics.
    ref = x / jnp.mean(x, axis=-1, keepdims=True) * weight
    assert y.shape == x.shape and y.dtype == x.dtype
    err = float(jnp.max(jnp.abs(y - ref)))
    assert err < 1e-4, err

    print("KERNEL_OK")
</pallas_src>

<mosaic_0001>
module attributes {stable_mosaic.version = 11 : i64} {
  func.func @_seg_matmul_kernel(%arg0: i32, %arg1: memref<4x128xf32, #tpu.memory_space<vmem>>, %arg2: memref<128x128xbf16, #tpu.memory_space<vmem>>, %arg3: memref<1x128xf32, #tpu.memory_space<vmem>>, %arg4: memref<4x128xf32, #tpu.memory_space<vmem>>) attributes {dimension_semantics = [#tpu.dimension_semantics<parallel>], iteration_bounds = array<i64: 1>, scalar_prefetch = 0 : i64, scratch_operands = 0 : i64, tpu.core_type = #tpu.core_type<tc>, window_params = [{transform_indices = @transform_0, window_bounds = array<i64: 4, 128>}, {pipeline_mode = #tpu.pipeline_mode<synchronous>, transform_indices = @transform_1, window_bounds = array<i64: 128, 128>}, {pipeline_mode = #tpu.pipeline_mode<synchronous>, transform_indices = @transform_2, window_bounds = array<i64: 1, 128>}, {transform_indices = @transform_3, window_bounds = array<i64: 4, 128>}]} {
    %c0 = arith.constant 0 : index
    %c0_0 = arith.constant 0 : index
    %0 = vector.load %arg1[%c0, %c0_0] : memref<4x128xf32, #tpu.memory_space<vmem>>, vector<4x128xf32>
    %1 = arith.truncf %0 : vector<4x128xf32> to vector<4x128xbf16>
    %2 = arith.extf %1 : vector<4x128xbf16> to vector<4x128xf32>
    %3 = arith.subf %0, %2 : vector<4x128xf32>
    %4 = arith.truncf %3 : vector<4x128xf32> to vector<4x128xbf16>
    %c0_1 = arith.constant 0 : index
    %c0_2 = arith.constant 0 : index
    %5 = vector.load %arg2[%c0_1, %c0_2] : memref<128x128xbf16, #tpu.memory_space<vmem>>, vector<128x128xbf16>
    %cst = arith.constant dense<0.000000e+00> : vector<4x128xf32>
    %6 = tpu.matmul %1, %5, %cst {dimension_numbers = #tpu.dot_dimension_numbers<[1], [0], [0], [1], [0, 0, 1, 1], [], []>} : vector<4x128xbf16>, vector<128x128xbf16>, vector<4x128xf32> -> vector<4x128xf32>
    %cst_3 = arith.constant dense<0.000000e+00> : vector<4x128xf32>
    %7 = tpu.matmul %4, %5, %cst_3 {dimension_numbers = #tpu.dot_dimension_numbers<[1], [0], [0], [1], [0, 0, 1, 1], [], []>} : vector<4x128xbf16>, vector<128x128xbf16>, vector<4x128xf32> -> vector<4x128xf32>
    %8 = arith.addf %6, %7 : vector<4x128xf32>
    %9 = tpu.reciprocal %8 : vector<4x128xf32> -> vector<4x128xf32>
    %10 = arith.mulf %0, %9 : vector<4x128xf32>
    %c0_4 = arith.constant 0 : index
    %c0_5 = arith.constant 0 : index
    %11 = vector.load %arg3[%c0_4, %c0_5] : memref<1x128xf32, #tpu.memory_space<vmem>>, vector<1x128xf32>
    %12 = vector.broadcast %11 : vector<1x128xf32> to vector<4x128xf32>
    %13 = arith.mulf %10, %12 : vector<4x128xf32>
    %c0_6 = arith.constant 0 : index
    %c0_7 = arith.constant 0 : index
    %14 = vector.load %arg4[%c0_6, %c0_7] : memref<4x128xf32, #tpu.memory_space<vmem>>, vector<4x128xf32>
    tpu.vector_store %arg4[%c0_6, %c0_7], %13 {strides = array<i32>} : memref<4x128xf32, #tpu.memory_space<vmem>>, vector<4x128xf32>,
    return
  }
  func.func @transform_0(%arg0: i32) -> (i32, i32) {
    %c0_i32 = arith.constant 0 : i32
    %c0_i32_0 = arith.constant 0 : i32
    return %arg0, %c0_i32 : i32, i32
  }
  func.func @transform_1(%arg0: i32) -> (i32, i32) {
    %c0_i32 = arith.constant 0 : i32
    %c0_i32_0 = arith.constant 0 : i32
    %c0_i32_1 = arith.constant 0 : i32
    return %c0_i32, %c0_i32_0 : i32, i32
  }
  func.func @transform_2(%arg0: i32) -> (i32, i32) {
    %c0_i32 = arith.constant 0 : i32
    %c0_i32_0 = arith.constant 0 : i32
    %c0_i32_1 = arith.constant 0 : i32
    return %c0_i32, %c0_i32_0 : i32, i32
  }
  func.func @transform_3(%arg0: i32) -> (i32, i32) {
    %c0_i32 = arith.constant 0 : i32
    %c0_i32_0 = arith.constant 0 : i32
    return %arg0, %c0_i32 : i32, i32
  }
}

</mosaic_0001>

<bundles_post_ra>
// kernel: tpu_custom_call.1
= control target key start
LH: loop header
LB: loop body
LE: loop exit
PB: predicated region body
PF: predicated region fallthrough
CT: control target
= control target key end

     0   :  { %8 = vsyncpa [#allocation3], 0  ;;  %s448_s0 = inlined_call_operand.hbm [shape: f32[4,128], index: 0, kind: input, shape index: {}]   ;;  %s449_s1 = inlined_call_operand.hbm [shape: bf16[128,128], index: 1, kind: input, shape index: {}]   ;;  %s450_s2 = inlined_call_operand.vmem [shape: f32[1,128], index: 2, kind: input, shape index: {}]   ;;  %s451_s3 = inlined_call_operand.hbm [shape: f32[4,128], index: 3, kind: output, shape index: {}]  }
   0x1   :  { %9 = vsyncpa [#allocation6], 0 }
   0x2   :  { %10 = vsyncpa [#allocation4], 0  ;;  %s375_s12 = smov [#allocation2]   ;;  %s376_s14 = smov [#allocation5]  }
   0x3   :  { %s17_s13 = sshll.u32 %s375_s12, 4  ;;  %s26_s15 = sshll.u32 %s376_s14, 4  ;;  %s18_s13 = int_to_ptr.vmem [resolvable:$true] %s17_s13  ;;  %s402_s15 = int_to_ptr.vmem [resolvable:$true] %s26_s15 }
   0x4   :  { %s303_s18 = scalar_lea.hbm %s448_s0, 64 }
   0x5   :  { %p304_p0 = scmp.ne.s32.totalorder %s448_s0, %s303_s18  ;;  %p307_p1 = scmp.lt.u32.totalorder %s303_s18, %s448_s0 }
   0x7   :  { %p309_p2 = pnand %p307_p1, %p304_p0 }
   0x9   :  { %312 = shalt.err (!%p309_p2)
}
   0xa   :  { %s313_s23 = scalar_lea.vmem %s18_s13, 64  ;;  %p318_p4 = scmp.lt.s32.totalorder %s18_s13, %s18_s13 }
   0xb   :  { %p314_p3 = scmp.ne.s32.totalorder %s18_s13, %s313_s23  ;;  %p319_p5 = scmp.lt.s32.totalorder %s313_s23, %s313_s23 }
   0xd   :  { %p320_p6 = por %p319_p5, %p318_p4 }
   0xf   :  { %p321_p7 = pnand %p320_p6, %p314_p3 }
  0x11   :  { %324 = shalt.err (!%p321_p7)
}
  0x12   :  { %20 = dma.hbm_to_vmem [thread:$0]  %s448_s0, 64, %s18_s13, [#allocation3]  }
  0x13   :  { %s325_s28 = scalar_lea.hbm %s449_s1, 1024 }
  0x14   :  { %p326_p8 = scmp.ne.s32.totalorder %s449_s1, %s325_s28  ;;  %p329_p9 = scmp.lt.u32.totalorder %s325_s28, %s449_s1 }
  0x16   :  { %p331_p10 = pnand %p329_p9, %p326_p8 }
  0x18   :  { %334 = shalt.err (!%p331_p10)
}
  0x19   :  { %s335_s6 = scalar_lea.vmem %s402_s15, 1024  ;;  %p340_p12 = scmp.lt.s32.totalorder %s402_s15, %s402_s15 }
  0x1a   :  { %p336_p11 = scmp.ne.s32.totalorder %s402_s15, %s335_s6  ;;  %p341_p13 = scmp.lt.s32.totalorder %s335_s6, %s335_s6 }
  0x1c   :  { %p342_p0 = por %p341_p13, %p340_p12 }
  0x1e   :  { %p343_p1 = pnand %p342_p0, %p336_p11 }
  0x20   :  { %346 = shalt.err (!%p343_p1)
}
  0x21   :  { %s377_s0 = smov 64   ;;  %s378_s7 = smov 4  }
  0x22   :  { %32 = dma.hbm_to_vmem [thread:$0]  %s449_s1, 1024, %s402_s15, [#allocation6], %s377_s0, %s377_s0, %s378_s7  }
  0x23   :  { %369 = dma.done.wait [#allocation3], 64  }
  0x24   :  { %370 = vsyncadd [#allocation3], 4294967232 }
  0x25   :  { %371 = dma.done.wait [#allocation6], 1024  }
  0x26   :  { %372 = vsyncadd [#allocation6], 4294966272  ;;  %v379_v0 = vmov 0.0   ;;  %vm380_vm0 = vmmov 0   ;;  %v293_v1 = vld [vmem:[#allocation5] sm:$0xff]   ;;  %v294_v2 = vld [vmem:[#allocation5 + $0x8] sm:$0xff]  }
  0x27   :  { %245 = vmatprep.subr.bf16.mxu1 %v379_v0  ;;  %265 = vmatprep.subr.bf16.mxu0 %v379_v0  ;;  %v295_v3 = vld [vmem:[#allocation5 + $0x10] sm:$0xff]   ;;  %v296_v4 = vld [vmem:[#allocation5 + $0x18] sm:$0xff]   ;;  %v297_v5 = vld [vmem:[#allocation5 + $0x20] sm:$0xff]   ;;  %s381_s11 = smov [#allocation7]  }
  0x28   :  { %261 = vmatprep.mubr.msk.bf16.mxu1 %vm380_vm0, %v379_v0  ;;  %281 = vmatprep.mubr.msk.bf16.mxu0 %vm380_vm0, %v379_v0  ;;  %v42_v6 = vld [vmem:[#allocation2] sm:$0xf]  ;;  %v298_v8 = vld [vmem:[#allocation5 + $0x28] sm:$0xff]   ;;  %v299_v10 = vld [vmem:[#allocation5 + $0x30] sm:$0xff]   ;;  %s208_s12 = sshll.u32 %s381_s11, 4  ;;  %s209_s12 = int_to_ptr.vmem [resolvable:$true] %s208_s12 }
  0x29   :  { %246 = vmatpush3.bf16.msra.mxu1 %v293_v1  ;;  %266 = vmatpush3.bf16.msra.mxu0 %v293_v1  ;;  %v43_v7 = vpack.c.bf16 %v42_v6, %v42_v6  ;;  %v300_v12 = vld [vmem:[#allocation5 + $0x38] sm:$0xff]   ;;  %s347_s13 = scalar_lea.vmem %s209_s12, 64  ;;  %p352_p3 = scmp.lt.s32.totalorder %s209_s12, %s209_s12 }
  0x2a   :  { %247 = vmatprep.subr.bf16.mxu1 %v379_v0  ;;  %267 = vmatprep.subr.bf16.mxu0 %v379_v0  ;;  %v226_v24 = vld [vmem:[%s450_s2] ss:$0 sm:$0xff]  ;;  %p348_p2 = scmp.ne.s32.totalorder %s209_s12, %s347_s13  ;;  %p353_p4 = scmp.lt.s32.totalorder %s347_s13, %s347_s13 }
  0x2b   :  { %v44_v9 = vunpack.c.l.bf16 %v43_v7 }
  0x2c   :  { %p354_p5 = por %p353_p4, %p352_p3 }
  0x2d   :  { %248 = vmatpush3.bf16.msra.mxu1 %v294_v2  ;;  %268 = vmatpush3.bf16.msra.mxu0 %v294_v2  ;;  %v45_v11 = vsub.f32 %v42_v6, %v44_v9 }
  0x2e   :  { %249 = vmatprep.subr.bf16.mxu1 %v379_v0  ;;  %269 = vmatprep.subr.bf16.mxu0 %v379_v0  ;;  %p355_p6 = pnand %p354_p5, %p348_p2 }
  0x2f   :  { %v46_v13 = vpack.c.bf16 %v45_v11, %v45_v11 }
  0x31   :  { %250 = vmatpush3.bf16.msra.mxu1 %v295_v3  ;;  %270 = vmatpush3.bf16.msra.mxu0 %v295_v3 }
  0x32   :  { %251 = vmatprep.subr.bf16.mxu1 %v379_v0  ;;  %271 = vmatprep.subr.bf16.mxu0 %v379_v0 }
  0x35   :  { %252 = vmatpush3.bf16.msra.mxu1 %v296_v4  ;;  %272 = vmatpush3.bf16.msra.mxu0 %v296_v4 }
  0x36   :  { %253 = vmatprep.subr.bf16.mxu1 %v379_v0  ;;  %273 = vmatprep.subr.bf16.mxu0 %v379_v0 }
  0x39   :  { %254 = vmatpush3.bf16.msra.mxu1 %v297_v5  ;;  %274 = vmatpush3.bf16.msra.mxu0 %v297_v5 }
  0x3a   :  { %255 = vmatprep.subr.bf16.mxu1 %v379_v0  ;;  %275 = vmatprep.subr.bf16.mxu0 %v379_v0 }
  0x3d   :  { %256 = vmatpush3.bf16.msra.mxu1 %v298_v8  ;;  %276 = vmatpush3.bf16.msra.mxu0 %v298_v8 }
  0x3e   :  { %257 = vmatprep.subr.bf16.mxu1 %v379_v0  ;;  %277 = vmatprep.subr.bf16.mxu0 %v379_v0 }
  0x41   :  { %258 = vmatpush3.bf16.msra.mxu1 %v299_v10  ;;  %278 = vmatpush3.bf16.msra.mxu0 %v299_v10 }
  0x42   :  { %259 = vmatprep.subr.bf16.mxu1 %v379_v0  ;;  %279 = vmatprep.subr.bf16.mxu0 %v379_v0 }
  0x45   :  { %260 = vmatpush3.bf16.msra.mxu1 %v300_v12  ;;  %280 = vmatpush3.bf16.msra.mxu0 %v300_v12 }
  0x48   :  { %262 = vmatmul.mubr.bf16.vlgmr.msra.gmra.mrb[0].mxu1 %v46_v13  ;;  %282 = vmatmul.mubr.bf16.vlgmr.msra.gmra.mrb[0].mxu0 %v43_v7 }
 0x11b   :  { %v145_v14 = vpop.f32.mrb[0].mxu1  ;;  %v185_v15 = vpop.f32.mrb[0].mxu0 }
 0x11c   :  { %v186_v16 = vadd.f32 %v185_v15, %v145_v14  ;;  %v263_v17 = vpop.f32.mrb[1].mxu1  ;;  %v283_v18 = vpop.f32.mrb[1].mxu0 }
 0x11d   :  { %v148_v19 = vpop.f32.mrb[2].mxu1  ;;  %v188_v20 = vpop.f32.mrb[2].mxu0 }
 0x11e   :  { %301 = vrcp.f32 %v186_v16  ;;  %v264_v21 = vpop.f32.mrb[3].mxu1  ;;  %v284_v22 = vpop.f32.mrb[3].mxu0 }
 0x128   :  { %v302_v23 = vpop.eup %301 }
 0x129   :  { %v192_v25 = vmul.f32 %v302_v23, %v42_v6 }
 0x12b   :  { %v200_v26 = vmul.f32 %v226_v24, %v192_v25 }
 0x12d   :  { %201 = vst [vmem:[#allocation7] sm:$0xf] %v200_v26 }
 0x12e   :  { %358 = shalt.err (!%p355_p6)
}
 0x12f   :  { %s359_s16 = scalar_lea.hbm %s451_s3, 64 }
 0x130   :  { %p360_p7 = scmp.ne.s32.totalorder %s451_s3, %s359_s16  ;;  %p363_p8 = scmp.lt.u32.totalorder %s359_s16, %s451_s3 }
 0x132   :  { %p365_p9 = pnand %p363_p8, %p360_p7 }
 0x134   :  { %368 = shalt.err (!%p365_p9)
}
 0x135   :  { %211 = dma.vmem_to_hbm [thread:$0]  %s209_s12, 64, %s451_s3, [#allocation4]  }
 0x136   :  { %373 = dma.done.wait [#allocation4], 64  }
 0x137   :  { %374 = vsyncadd [#allocation4], 4294967232 }
 0x138   :  { %215 = vsyncpa [#allocation3], 1 }
 0x139   :  { %216 = vsyncpa [#allocation6], 1 }
 0x13a   :  { %217 = vsyncpa [#allocation4], 1 }

</bundles_post_ra>
